<compile_context>
chip_gen: v5e
topology: v5e:2x2
jax: 0.10.0
libtpu: 0.0.40
codegen_flags: <defaults>
</compile_context>

<pallas_src>
import jax
import jax.numpy as jnp
from jax.experimental import pallas as pl
from jax.experimental.pallas import tpu as pltpu

_HIDDEN = 64      # both hidden layers are 64-wide (nn.Linear(.,64))
LANES = 128       # VMEM lane width (used only for footprint estimates)


def _round_up(n, m):
    return ((n + m - 1) // m) * m


# ------------------------------ parameter packing -----------------------------

def pack_params(w1, b1, w2, b2, w3, b3, *, compute_dtype=jnp.bfloat16):
    """Pack the six parameter tensors into two resident slabs.

    w_slab (rows, 64) in compute dtype:
        rows [0 : 16)   -> w1 (state_dim real rows, rest zero)
        rows [16 : 80)  -> w2
        rows [80 : 144) -> w3 (cols >= action_dim are zero)
    b_slab (8, 64) f32: row 0 = b1, row 1 = b2, row 2 = b3 (padding zero).

    Layers 2/3 contract over K = 64 (no 128-lane padded K), so correctness does
    not rely on zero-padded lanes of the activations.
    """
    state_dim, hidden = w1.shape
    action_dim = w3.shape[1]
    assert hidden == _HIDDEN and w2.shape == (hidden, hidden)
    assert action_dim <= hidden

    s_rows = _round_up(max(state_dim, 1), 16)   # bf16 sublane-tile aligned
    r_w2 = s_rows
    r_w3 = s_rows + hidden
    rows = s_rows + 2 * hidden                  # 144 for state_dim <= 16

    w_slab = jnp.zeros((rows, hidden), jnp.float32)
    w_slab = w_slab.at[0:state_dim, :].set(w1)
    w_slab = w_slab.at[r_w2:r_w2 + hidden, :].set(w2)
    w_slab = w_slab.at[r_w3:r_w3 + hidden, 0:action_dim].set(w3)
    w_slab = w_slab.astype(compute_dtype)

    b_slab = jnp.zeros((8, hidden), jnp.float32)
    b_slab = b_slab.at[0, :].set(b1.reshape(-1))
    b_slab = b_slab.at[1, :].set(b2.reshape(-1))
    b_slab = b_slab.at[2, 0:action_dim].set(b3.reshape(-1))

    a_pad = _round_up(max(action_dim, 1), 8)    # narrow lane-padded output width
    return dict(w_slab=w_slab, b_slab=b_slab, state_dim=state_dim,
                action_dim=action_dim, a_pad=a_pad, r_w2=r_w2, r_w3=r_w3,
                compute_dtype=compute_dtype)


# ----------------------------------- kernel -----------------------------------

def _make_kernel(state_dim, r_w2, r_w3, compute_dtype):
    hidden = _HIDDEN

    def kernel(x_ref, w_ref, b_ref, o_ref):
        # x tile: (Bt, state_dim) f32.  Only the real state_dim lanes are ever
        # read (layer-1 K == state_dim), so the uninitialised VMEM lanes behind
        # the lane-sparse input DMA are never touched.
        x = x_ref[...]

        # ---- layer 1: x @ w1 + b1, ReLU (MXU, K = state_dim) ----------------
        # Tiny K routed through the otherwise-idle MXU; the old VPU broadcast
        # loop becomes the saturating slot at large batch tiles.
        w1 = w_ref[0:state_dim, :]                       # (S, 64) bf16, static slice
        h1 = jnp.dot(x.astype(compute_dtype), w1,
                     preferred_element_type=jnp.float32) + b_ref[0:1, :]
        h1 = jnp.maximum(h1, 0.0)                        # (Bt, 64) f32

        # ---- layer 2: h1 @ w2 + b2, ReLU (MXU, K = 64) ----------------------
        w2 = w_ref[r_w2:r_w2 + hidden, :]                # (64, 64), tile-aligned rows
        h2 = jnp.dot(h1.astype(compute_dtype), w2,
                     preferred_element_type=jnp.float32) + b_ref[1:2, :]
        h2 = jnp.maximum(h2, 0.0)                        # (Bt, 64) f32

        # ---- layer 3: h2 @ w3 + b3 (MXU, K = 64) ----------------------------
        w3 = w_ref[r_w3:r_w3 + hidden, :]                # (64, 64)
        out = jnp.dot(h2.astype(compute_dtype), w3,
                      preferred_element_type=jnp.float32) + b_ref[2:3, :]

        # Narrow store: only a_pad (= round_up(action_dim, 8)) columns go back
        # to HBM -> ~16x less writeback than a 128-wide f32 tile.
        o_ref[...] = out[:, :o_ref.shape[-1]].astype(o_ref.dtype)

    return kernel


# ------------------------------ tiling / VMEM plan ----------------------------

def _choose_block_b(B, cap=4096):
    """Batch tile: <= cap (safe for v7x's 64 MiB VMEM), multiple of 8, an exact
    divisor of B when possible (avoids a wrapper-side pad pass), and >= 2 grid
    steps for large B so dimension_semantics=('parallel',) can shard the batch
    tiles across both v7x TensorCores."""
    if B <= 1024:
        return B, B                          # single tile; block dims == full dims
    hi = min(cap, max(8, (B // 2) // 8 * 8))
    for bb in range(hi, 7, -8):              # largest 8-aligned exact divisor
        if B % bb == 0:
            return bb, B
    if B <= cap:
        return B, B                          # no clean split; one un-padded tile
    b_pad = _round_up(B, hi)
    return hi, b_pad


def _vmem_limit_bytes(block_b, state_dim, a_pad, rows):
    def t(r, c, item):                       # VMEM footprint of one (r, c) tile
        return _round_up(max(r, 1), 8) * _round_up(max(c, 1), LANES) * item
    dbuf = 2 * (t(block_b, state_dim, 4) +   # x        (double-buffered)
                t(block_b, a_pad, 4) +       # out      (double-buffered)
                t(rows, _HIDDEN, 2) +        # weight slab
                t(8, _HIDDEN, 4))            # biases
    live = 6 * t(block_b, _HIDDEN, 4)        # h1/h2/out f32 + bf16 casts, headroom
    est = dbuf + live + (2 << 20)
    # >= default scoped limit everywhere, <= v7x physical VMEM.
    return int(min(max(est, 32 << 20), 64 << 20))


# ----------------------------------- wrapper ----------------------------------

def qnetwork_forward(x, packed, *, block_b_cap=4096):
    """x: (B, state_dim) f32. Returns (B, action_dim) f32."""
    B, S = x.shape
    assert S == packed["state_dim"]
    w_slab, b_slab = packed["w_slab"], packed["b_slab"]
    rows, hidden = w_slab.shape
    a_pad, action_dim = packed["a_pad"], packed["action_dim"]

    block_b, b_pad = _choose_block_b(B, block_b_cap)
    if b_pad != B:
        x = jnp.pad(x, ((0, b_pad - B), (0, 0)))
    grid = (b_pad // block_b,)

    kernel = _make_kernel(S, packed["r_w2"], packed["r_w3"],
                          packed["compute_dtype"])
    out = pl.pallas_call(
        kernel,
        out_shape=jax.ShapeDtypeStruct((b_pad, a_pad), jnp.float32),
        grid_spec=pltpu.PrefetchScalarGridSpec(
            num_scalar_prefetch=0,
            grid=grid,
            in_specs=[
                # x: batch-tiled. Lane-sparse (block_b, state_dim) DMA accepted:
                # tiny next to the (now narrow) output stream.
                pl.BlockSpec((block_b, S), lambda i: (i, 0)),
                pl.BlockSpec((rows, hidden), lambda i: (0, 0)),   # weights resident
                pl.BlockSpec((8, hidden), lambda i: (0, 0)),      # biases resident
            ],
            out_specs=pl.BlockSpec((block_b, a_pad), lambda i: (i, 0)),
        ),
        compiler_params=pltpu.CompilerParams(
            dimension_semantics=("parallel",),          # megacore / v7x 2-TC sharding
            vmem_limit_bytes=_vmem_limit_bytes(block_b, S, a_pad, rows)),
    )(x, w_slab, b_slab)

    out = out[:B] if b_pad != B else out
    return out[:, :action_dim] if a_pad != action_dim else out


# ----------------------------- init & references ------------------------------

def init_params(key, state_dim, action_dim, hidden=_HIDDEN):
    # PyTorch-style init: U(-1/sqrt(fan_in), 1/sqrt(fan_in)); weights stored
    # (in, out) so y = x @ W + b == PyTorch's x @ W_pt.T + b.
    def lin(k, fan_in, fan_out):
        kw, kb = jax.random.split(k)
        bound = 1.0 / jnp.sqrt(jnp.float32(fan_in))
        w = jax.random.uniform(kw, (fan_in, fan_out), jnp.float32, -bound, bound)
        b = jax.random.uniform(kb, (fan_out,), jnp.float32, -bound, bound)
        return w, b

    k1, k2, k3 = jax.random.split(key, 3)
    w1, b1 = lin(k1, state_dim, hidden)
    w2, b2 = lin(k2, hidden, hidden)
    w3, b3 = lin(k3, hidden, action_dim)
    return dict(w1=w1, b1=b1, w2=w2, b2=b2, w3=w3, b3=b3)


def qnetwork_ref_f32(x, p):
    h1 = jnp.maximum(x @ p["w1"] + p["b1"], 0.0)
    h2 = jnp.maximum(h1 @ p["w2"] + p["b2"], 0.0)
    return h2 @ p["w3"] + p["b3"]


def qnetwork_ref_mixed(x, packed):
    """Pure-JAX mirror of the kernel numerics (bf16 weights, f32 accumulation)."""
    cdt = packed["compute_dtype"]
    S, A, H = packed["state_dim"], packed["action_dim"], _HIDDEN
    r2, r3 = packed["r_w2"], packed["r_w3"]
    w, b = packed["w_slab"], packed["b_slab"]
    h1 = jnp.maximum(jnp.dot(x.astype(cdt), w[0:S, :],
                             preferred_element_type=jnp.float32) + b[0:1, :], 0.0)
    h2 = jnp.maximum(jnp.dot(h1.astype(cdt), w[r2:r2 + H, :],
                             preferred_element_type=jnp.float32) + b[1:2, :], 0.0)
    out = jnp.dot(h2.astype(cdt), w[r3:r3 + H, :],
                  preferred_element_type=jnp.float32) + b[2:3, :]
    return out[:, :A]


if __name__ == "__main__":
    key = jax.random.PRNGKey(0)
    kx, kp = jax.random.split(key)

    batch, state_dim, action_dim = 8, 4, 2     # CartPole-like QNetwork shapes
    x = jax.random.normal(kx, (batch, state_dim), dtype=jnp.float32)
    raw = init_params(kp, state_dim, action_dim)
    packed = pack_params(raw["w1"], raw["b1"], raw["w2"], raw["b2"],
                         raw["w3"], raw["b3"], compute_dtype=jnp.bfloat16)

    out = jax.block_until_ready(qnetwork_forward(x, packed))
    assert out.shape == (batch, action_dim)

    ref_mixed = qnetwork_ref_mixed(x, packed)   # same mixed-precision math
    ref_f32 = qnetwork_ref_f32(x, raw)          # exact PyTorch f32 semantics
    assert jnp.allclose(out, ref_mixed, atol=5e-3, rtol=5e-3), \
        f"mismatch vs mixed ref: {jnp.max(jnp.abs(out - ref_mixed))}"
    assert jnp.allclose(out, ref_f32, atol=5e-2, rtol=5e-2), \
        f"mismatch vs f32 ref: {jnp.max(jnp.abs(out - ref_f32))}"

    # Multi-tile grid path (2 batch tiles of 1024 -> exercises the parallel
    # grid / megacore sharding and the un-padded exact-divisor tiling).
    xb = jax.random.normal(kx, (2048, state_dim), dtype=jnp.float32)
    outb = jax.block_until_ready(qnetwork_forward(xb, packed))
    assert outb.shape == (2048, action_dim)
    refb = qnetwork_ref_mixed(xb, packed)
    assert jnp.allclose(outb, refb, atol=5e-3, rtol=5e-3), \
        f"mismatch vs mixed ref (B=2048): {jnp.max(jnp.abs(outb - refb))}"

    print("KERNEL_OK")
</pallas_src>

<mosaic_0001>
module attributes {stable_mosaic.version = 11 : i64} {
  func.func @kernel(%arg0: i32, %arg1: memref<8x4xf32, #tpu.memory_space<vmem>>, %arg2: memref<144x64xbf16, #tpu.memory_space<vmem>>, %arg3: memref<8x64xf32, #tpu.memory_space<vmem>>, %arg4: memref<8x8xf32, #tpu.memory_space<vmem>>) attributes {dimension_semantics = [#tpu.dimension_semantics<parallel>], iteration_bounds = array<i64: 1>, scalar_prefetch = 0 : i64, scratch_operands = 0 : i64, tpu.core_type = #tpu.core_type<tc>, window_params = [{transform_indices = @transform_0, window_bounds = array<i64: 8, 4>}, {pipeline_mode = #tpu.pipeline_mode<synchronous>, transform_indices = @transform_1, window_bounds = array<i64: 144, 64>}, {pipeline_mode = #tpu.pipeline_mode<synchronous>, transform_indices = @transform_2, window_bounds = array<i64: 8, 64>}, {transform_indices = @transform_3, window_bounds = array<i64: 8, 8>}]} {
    %c0 = arith.constant 0 : index
    %c0_0 = arith.constant 0 : index
    %0 = vector.load %arg1[%c0, %c0_0] : memref<8x4xf32, #tpu.memory_space<vmem>>, vector<8x4xf32>
    %c0_1 = arith.constant 0 : index
    %c0_2 = arith.constant 0 : index
    %1 = vector.load %arg2[%c0_1, %c0_2] : memref<144x64xbf16, #tpu.memory_space<vmem>>, vector<4x64xbf16>
    %2 = arith.truncf %0 : vector<8x4xf32> to vector<8x4xbf16>
    %cst = arith.constant dense<0.000000e+00> : vector<8x64xf32>
    %3 = tpu.matmul %2, %1, %cst {dimension_numbers = #tpu.dot_dimension_numbers<[1], [0], [0], [1], [0, 0, 1, 1], [], []>} : vector<8x4xbf16>, vector<4x64xbf16>, vector<8x64xf32> -> vector<8x64xf32>
    %c0_3 = arith.constant 0 : index
    %c0_4 = arith.constant 0 : index
    %4 = vector.load %arg3[%c0_3, %c0_4] : memref<8x64xf32, #tpu.memory_space<vmem>>, vector<1x64xf32>
    %5 = vector.broadcast %4 : vector<1x64xf32> to vector<8x64xf32>
    %6 = arith.addf %3, %5 : vector<8x64xf32>
    %cst_5 = arith.constant 0.000000e+00 : f32
    %7 = vector.broadcast %cst_5 : f32 to vector<8x64xf32>
    %8 = arith.maximumf %6, %7 : vector<8x64xf32>
    %c16 = arith.constant 16 : index
    %c0_6 = arith.constant 0 : index
    %9 = vector.load %arg2[%c16, %c0_6] : memref<144x64xbf16, #tpu.memory_space<vmem>>, vector<64x64xbf16>
    %10 = arith.truncf %8 : vector<8x64xf32> to vector<8x64xbf16>
    %cst_7 = arith.constant dense<0.000000e+00> : vector<8x64xf32>
    %11 = tpu.matmul %10, %9, %cst_7 {dimension_numbers = #tpu.dot_dimension_numbers<[1], [0], [0], [1], [0, 0, 1, 1], [], []>} : vector<8x64xbf16>, vector<64x64xbf16>, vector<8x64xf32> -> vector<8x64xf32>
    %c1 = arith.constant 1 : index
    %c0_8 = arith.constant 0 : index
    %12 = vector.load %arg3[%c1, %c0_8] : memref<8x64xf32, #tpu.memory_space<vmem>>, vector<1x64xf32>
    %13 = vector.broadcast %12 : vector<1x64xf32> to vector<8x64xf32>
    %14 = arith.addf %11, %13 : vector<8x64xf32>
    %cst_9 = arith.constant 0.000000e+00 : f32
    %15 = vector.broadcast %cst_9 : f32 to vector<8x64xf32>
    %16 = arith.maximumf %14, %15 : vector<8x64xf32>
    %c80 = arith.constant 80 : index
    %c0_10 = arith.constant 0 : index
    %17 = vector.load %arg2[%c80, %c0_10] : memref<144x64xbf16, #tpu.memory_space<vmem>>, vector<64x64xbf16>
    %18 = arith.truncf %16 : vector<8x64xf32> to vector<8x64xbf16>
    %cst_11 = arith.constant dense<0.000000e+00> : vector<8x64xf32>
    %19 = tpu.matmul %18, %17, %cst_11 {dimension_numbers = #tpu.dot_dimension_numbers<[1], [0], [0], [1], [0, 0, 1, 1], [], []>} : vector<8x64xbf16>, vector<64x64xbf16>, vector<8x64xf32> -> vector<8x64xf32>
    %c2 = arith.constant 2 : index
    %c0_12 = arith.constant 0 : index
    %20 = vector.load %arg3[%c2, %c0_12] : memref<8x64xf32, #tpu.memory_space<vmem>>, vector<1x64xf32>
    %21 = vector.broadcast %20 : vector<1x64xf32> to vector<8x64xf32>
    %22 = arith.addf %19, %21 : vector<8x64xf32>
    %23 = vector.extract_strided_slice %22 {offsets = [0, 0], sizes = [8, 8], strides = [1, 1]} : vector<8x64xf32> to vector<8x8xf32>
    %c0_13 = arith.constant 0 : index
    %c0_14 = arith.constant 0 : index
    %24 = vector.load %arg4[%c0_13, %c0_14] : memref<8x8xf32, #tpu.memory_space<vmem>>, vector<8x8xf32>
    tpu.vector_store %arg4[%c0_13, %c0_14], %23 {strides = array<i32>} : memref<8x8xf32, #tpu.memory_space<vmem>>, vector<8x8xf32>,
    return
  }
  func.func @transform_0(%arg0: i32) -> (i32, i32) {
    %c0_i32 = arith.constant 0 : i32
    %c0_i32_0 = arith.constant 0 : i32
    return %arg0, %c0_i32 : i32, i32
  }
  func.func @transform_1(%arg0: i32) -> (i32, i32) {
    %c0_i32 = arith.constant 0 : i32
    %c0_i32_0 = arith.constant 0 : i32
    %c0_i32_1 = arith.constant 0 : i32
    return %c0_i32, %c0_i32_0 : i32, i32
  }
  func.func @transform_2(%arg0: i32) -> (i32, i32) {
    %c0_i32 = arith.constant 0 : i32
    %c0_i32_0 = arith.constant 0 : i32
    %c0_i32_1 = arith.constant 0 : i32
    return %c0_i32, %c0_i32_0 : i32, i32
  }
  func.func @transform_3(%arg0: i32) -> (i32, i32) {
    %c0_i32 = arith.constant 0 : i32
    %c0_i32_0 = arith.constant 0 : i32
    return %arg0, %c0_i32 : i32, i32
  }
}

</mosaic_0001>

<bundles_post_ra>
// kernel: tpu_custom_call.1
= control target key start
LH: loop header
LB: loop body
LE: loop exit
PB: predicated region body
PF: predicated region fallthrough
CT: control target
= control target key end

     0   :  { %vm25_vm0 = vcmask 1041408   ;;  %vm21_vm1 = vcmask 31744   ;;  %s301_s0 = inlined_call_operand.vmem [shape: f32[8,4], index: 0, kind: input, shape index: {}]   ;;  %s302_s1 = inlined_call_operand.vmem [shape: bf16[144,64], index: 1, kind: input, shape index: {}]   ;;  %s303_s2 = inlined_call_operand.vmem [shape: f32[8,64], index: 2, kind: input, shape index: {}]   ;;  %s304_s3 = inlined_call_operand.hbm [shape: f32[8,8], index: 3, kind: output, shape index: {}]  }
   0x1   :  { %v17_v0 = vld [vmem:[%s302_s1] sm:$0x3]  ;;  %v202_v5 = vld [vmem:[%s302_s1 + $0x18] sm:$0xff] }
   0x2   :  { %v16_v1 = vld [vmem:[%s301_s0] sm:$0xff]  ;;  %v27_v3 = vsel %vm25_vm0, %v17_v0, 0 }
   0x3   :  { %v203_v2 = vld [vmem:[%s302_s1 + $0x20] sm:$0xff]  ;;  %v18_v4 = vpack.c.bf16 %v16_v1, %v16_v1  ;;  %36 = vmatpush.bf16.msra.mxu0 %v27_v3 }
   0x4   :  { %86 = vmatpush.bf16.msra.mxu1 %v203_v2 }
   0x5   :  { %8 = vsyncpa [#allocation3], 0  ;;  %v201_v6 = vld [vmem:[%s302_s1 + $0x10] sm:$0xff]  ;;  %v200_v7 = vld [vmem:[%s302_s1 + $0x8] sm:$0xff]  ;;  %vm78_vm2 = vcmask 523264   ;;  %s238_s10 = smov [#allocation2]  }
   0x6   :  { %165 = vmatmul.msk.bf16.vlgmr.msra.gmra.mxu0 %vm21_vm1, %v18_v4  ;;  %v207_v8 = vld [vmem:[%s302_s1 + $0x40] sm:$0xff]  ;;  %v206_v9 = vld [vmem:[%s302_s1 + $0x38] sm:$0xff]  ;;  %v205_v16 = vld [vmem:[%s302_s1 + $0x30] sm:$0xff]  ;;  %s154_s11 = sshll.u32 %s238_s10, 4  ;;  %vm147_vm3 = vcmask 64512   ;;  %s155_s11 = int_to_ptr.vmem [resolvable:$true] %s154_s11 }
   0x7   :  { %138 = vmatpush.bf16.msra.mxu2 %v207_v8  ;;  %v209_v10 = vld [vmem:[%s303_s2] ss:$0 sm:$0xff]  ;;  %v204_v17 = vld [vmem:[%s302_s1 + $0x28] sm:$0xff]  ;;  %v210_v18 = vld [vmem:[%s303_s2 + $0x1] ss:$0 sm:$0xff]  ;;  %s156_s1 = sshll.u32 %s304_s3, 4  ;;  %s157_s1 = int_to_ptr.hbm [resolvable:$true] %s156_s1 }
   0x8   :  { %87 = vmatpush.bf16.msra.mxu1 %v202_v5  ;;  %v211_v24 = vld [vmem:[%s303_s2 + $0x2] ss:$0 sm:$0xff] }
   0xb   :  { %139 = vmatpush.bf16.msra.mxu2 %v206_v9 }
   0xc   :  { %88 = vmatpush.bf16.msra.mxu1 %v201_v6 }
   0xf   :  { %140 = vmatpush.bf16.msra.mxu2 %v205_v16 }
  0x10   :  { %89 = vmatpush.bf16.msra.mxu1 %v200_v7 }
  0x13   :  { %141 = vmatpush.bf16.msra.mxu2 %v204_v17 }
  0x83   :  { %v38_v11 = vpop.f32.mrf.mxu0 }
  0x84   :  { %v39_v12 = vadd.f32 %v209_v10, %v38_v11 }
  0x86   :  { %v42_v13 = vmax.f32 %v39_v12, 0.0 }
  0x88   :  { %v51_v14 = vpack.c.bf16 %v42_v13, %v42_v13 }
  0x8a   :  { %182 = vmatmul.msk.bf16.vlgmr.msra.gmra.mxu1 %vm78_vm2, %v51_v14 }
  0x8b   :  { %v40_v15 = vpop.f32.mrf.mxu0 }
 0x107   :  { %v91_v19 = vpop.f32.mrf.mxu1 }
 0x108   :  { %v92_v20 = vadd.f32 %v210_v18, %v91_v19 }
 0x10a   :  { %v95_v21 = vmax.f32 %v92_v20, 0.0 }
 0x10c   :  { %v104_v22 = vpack.c.bf16 %v95_v21, %v95_v21 }
 0x10e   :  { %199 = vmatmul.msk.bf16.vlgmr.msra.gmra.mxu2 %vm78_vm2, %v104_v22 }
 0x10f   :  { %v93_v23 = vpop.f32.mrf.mxu1 }
 0x191   :  { %v143_v25 = vpop.f32.mrf.mxu2 }
 0x192   :  { %v144_v26 = vadd.f32 %v211_v24, %v143_v25 }
 0x194   :  { %148 = vst.msk [vmem:[#allocation2] sm:$0xff] %vm147_vm3, %v144_v26 }
 0x195   :  { %159 = dma.vmem_to_hbm [thread:$0]  %s155_s11, 128, %s157_s1, [#allocation3]  }
 0x199   :  { %v145_v27 = vpop.f32.mrf.mxu2 }
 0x19a   :  { %236 = dma.done.wait [#allocation3], 128  }
 0x19b   :  { %237 = vsyncadd [#allocation3], 4294967168 }
 0x19c   :  { %164 = vsyncpa [#allocation3], 1 }

</bundles_post_ra>
